<compile_context>
chip_gen: v7x
topology: tpu7x:2x2x1
jax: 0.10.0
libtpu: 0.0.40
codegen_flags: <defaults>
</compile_context>

<pallas_src>
import jax
import jax.numpy as jnp
from jax.experimental import pallas as pl
from jax.experimental.pallas import tpu as pltpu

_LANE = 128      # lane width
_SUBLANE = 8     # f32 sublane width


def _linreg_kernel(w_ref, b_ref, x_ref, o_ref):
    # w_ref / b_ref: f32 SMEM scalars (shape (1,)); x_ref / o_ref: VMEM tiles.
    x = x_ref[...].astype(jnp.float32)
    o_ref[...] = (w_ref[0] * x + b_ref[0]).astype(o_ref.dtype)


def _tile_budget_bytes() -> int:
    """Per-tile byte budget, selected per TPU generation (defensively)."""
    kind = ""
    try:
        info = pltpu.get_tpu_info()
        kind = str(getattr(info, "chip_version", "") or "").lower()
    except Exception:
        kind = ""
    if not kind:
        try:
            kind = jax.devices()[0].device_kind.lower()
        except Exception:
            kind = ""
    # v4 / v5 family: lowest HBM BW and smallest scoped-VMEM defaults -> 2 MiB
    # tiles already hide the per-step overhead and keep 4 buffers << 16 MiB.
    if ("v4" in kind) or ("v5" in kind):
        return 2 * 1024 * 1024
    # v6e / v7x (and unknown newer): bigger tiles amortize per-step overhead.
    return 4 * 1024 * 1024


def _to_2d(x: jax.Array) -> jax.Array:
    """Reshape (free, contiguous) to a TPU-friendly 2-D [rows, cols] layout."""
    total = x.size
    # Common case: already lane-dense along the last dim.
    if x.ndim >= 2 and x.shape[-1] % _LANE == 0:
        return x.reshape(-1, x.shape[-1])
    # Otherwise try a fully lane-dense factorization total = rows * (128 * k).
    if total % _LANE == 0:
        q = total // _LANE
        k = 1
        for cand in range(min(q, 64), 0, -1):   # cols capped at 64*128 = 8192
            if q % cand == 0:
                k = cand
                break
        cols = _LANE * k
        return x.reshape(total // cols, cols)
    # Ragged fallback: keep the true last dim (only the trailing partial vreg
    # per row takes a masked store) -- no pad/slice HBM round-trip.
    if x.ndim >= 2:
        return x.reshape(-1, x.shape[-1])
    return x.reshape(1, total)


def linear_regression_forward(
    x: jax.Array, weights: jax.Array, bias: jax.Array, *, donate_x: bool = False
) -> jax.Array:
    """y = weights * x + bias (scalar weights/bias broadcast over x)."""
    assert weights.shape == (1,) and bias.shape == (1,)
    orig_shape = x.shape
    out_dtype = x.dtype
    if x.size == 0:
        return jnp.zeros(orig_shape, out_dtype)

    x2 = _to_2d(x)
    n, d = x2.shape
    itemsize = jnp.dtype(x2.dtype).itemsize
    # Packed-sublane granule: 8 rows for 4-byte, 16 for 2-byte, 32 for 1-byte.
    sublane = max(_SUBLANE, (4 // max(itemsize, 1)) * _SUBLANE)
    budget = _tile_budget_bytes()

    # Column tile: full (unpadded) width unless even a sublane-high full-width
    # block busts the byte budget (very wide rows) -> then tile cols by 128s.
    if d * sublane * itemsize <= budget:
        tc = d
    else:
        tc = max(_LANE, (budget // (sublane * itemsize)) // _LANE * _LANE)

    # Row tile: largest sublane multiple under the budget; partial boundary
    # blocks are handled by the pipeline (no padding needed).
    if n <= sublane:
        tn = n
    else:
        tn_max = max(sublane, (budget // (tc * itemsize)) // sublane * sublane)
        tn = min(tn_max, (n // sublane) * sublane)

    grid = (pl.cdiv(n, tn), pl.cdiv(d, tc))

    cp_kwargs = dict(dimension_semantics=("parallel", "parallel"))
    if budget > 2 * 1024 * 1024:
        # 4 buffers x 4 MiB = 16 MiB; request 32 MiB scoped VMEM explicitly
        # (<= scoped default on v6e/v7x, << physical VMEM everywhere).
        cp_kwargs["vmem_limit_bytes"] = 32 * 1024 * 1024

    y2 = pl.pallas_call(
        _linreg_kernel,
        out_shape=jax.ShapeDtypeStruct((n, d), out_dtype),
        grid=grid,
        in_specs=[
            pl.BlockSpec(memory_space=pltpu.SMEM),         # weights (f32 scalar)
            pl.BlockSpec(memory_space=pltpu.SMEM),         # bias    (f32 scalar)
            pl.BlockSpec((tn, tc), lambda i, j: (i, j)),   # x tile
        ],
        out_specs=pl.BlockSpec((tn, tc), lambda i, j: (i, j)),
        compiler_params=pltpu.CompilerParams(**cp_kwargs),
        input_output_aliases=({2: 0} if donate_x else {}),
    )(weights.astype(jnp.float32), bias.astype(jnp.float32), x2)

    return y2.reshape(orig_shape)


if __name__ == "__main__":
    key = jax.random.PRNGKey(0)
    kx1, kx2, kx3, kx4, kx5, kw, kb = jax.random.split(key, 7)

    # Deterministic "randn"-style parameter init (matches torch.randn(1) shapes).
    weights = jax.random.normal(kw, (1,), dtype=jnp.float32)
    bias = jax.random.normal(kb, (1,), dtype=jnp.float32)

    def ref(x):
        y = weights.astype(jnp.float32)[0] * x.astype(jnp.float32) \
            + bias.astype(jnp.float32)[0]
        return y.astype(x.dtype)

    # 1) Aligned 2-D f32 (lane-dense fast path).
    x1 = jax.random.normal(kx1, (64, 256), dtype=jnp.float32)
    y1 = jax.block_until_ready(linear_regression_forward(x1, weights, bias))
    assert y1.shape == x1.shape and y1.dtype == x1.dtype
    assert jnp.allclose(y1, ref(x1), atol=1e-6, rtol=1e-6)

    # 2) Ragged 2-D f32: no pad/slice round-trip, full-width block + partial row tile.
    x2 = jax.random.normal(kx2, (100, 200), dtype=jnp.float32)
    y2 = jax.block_until_ready(linear_regression_forward(x2, weights, bias))
    assert y2.shape == x2.shape and y2.dtype == x2.dtype
    assert jnp.allclose(y2, ref(x2), atol=1e-6, rtol=1e-6)

    # 3) 1-D input: free reshape to a lane-dense 2-D layout.
    x3 = jax.random.normal(kx3, (384,), dtype=jnp.float32)
    y3 = jax.block_until_ready(linear_regression_forward(x3, weights, bias))
    assert y3.shape == x3.shape
    assert jnp.allclose(y3, ref(x3), atol=1e-6, rtol=1e-6)

    # 4) bf16 input: params stay f32 in SMEM; FMA in f32; only the result is cast.
    x4 = jax.random.normal(kx4, (16, 128), dtype=jnp.bfloat16)
    y4 = jax.block_until_ready(linear_regression_forward(x4, weights, bias))
    assert y4.dtype == jnp.bfloat16 and y4.shape == x4.shape
    assert jnp.allclose(y4.astype(jnp.float32), ref(x4).astype(jnp.float32),
                        atol=1e-2, rtol=1e-2)

    # 5) Donated-input path (input_output_aliases={2: 0}).
    x5 = jax.random.normal(kx5, (64, 256), dtype=jnp.float32)
    y5_ref = ref(x5)
    fwd_donated = jax.jit(
        lambda xx, w, b: linear_regression_forward(xx, w, b, donate_x=True),
        donate_argnums=(0,),
    )
    y5 = jax.block_until_ready(fwd_donated(x5, weights, bias))
    assert jnp.allclose(y5, y5_ref, atol=1e-6, rtol=1e-6)

    print("KERNEL_OK")
</pallas_src>

<mosaic_0001>
module attributes {stable_mosaic.version = 11 : i64} {
  func.func @_linreg_kernel(%arg0: i32, %arg1: i32, %arg2: memref<1xf32, #tpu.memory_space<smem>>, %arg3: memref<1xf32, #tpu.memory_space<smem>>, %arg4: memref<64x256xf32, #tpu.memory_space<vmem>>, %arg5: memref<64x256xf32, #tpu.memory_space<vmem>>) attributes {dimension_semantics = [#tpu.dimension_semantics<parallel>, #tpu.dimension_semantics<parallel>], iteration_bounds = array<i64: 1, 1>, scalar_prefetch = 0 : i64, scratch_operands = 0 : i64, tpu.core_type = #tpu.core_type<tc>, window_params = [{transform_indices = @transform_0, window_bounds = array<i64: 1>}, {transform_indices = @transform_1, window_bounds = array<i64: 1>}, {transform_indices = @transform_2, window_bounds = array<i64: 64, 256>}, {transform_indices = @transform_3, window_bounds = array<i64: 64, 256>}]} {
    %c0 = arith.constant 0 : index
    %c0_0 = arith.constant 0 : index
    %0 = vector.load %arg4[%c0, %c0_0] : memref<64x256xf32, #tpu.memory_space<vmem>>, vector<64x256xf32>
    %c0_1 = arith.constant 0 : index
    %1 = memref.load %arg2[%c0_1] : memref<1xf32, #tpu.memory_space<smem>>
    %2 = vector.broadcast %1 : f32 to vector<64x256xf32>
    %3 = arith.mulf %2, %0 : vector<64x256xf32>
    %c0_2 = arith.constant 0 : index
    %4 = memref.load %arg3[%c0_2] : memref<1xf32, #tpu.memory_space<smem>>
    %5 = vector.broadcast %4 : f32 to vector<64x256xf32>
    %6 = arith.addf %3, %5 : vector<64x256xf32>
    %c0_3 = arith.constant 0 : index
    %c0_4 = arith.constant 0 : index
    %7 = vector.load %arg5[%c0_3, %c0_4] : memref<64x256xf32, #tpu.memory_space<vmem>>, vector<64x256xf32>
    tpu.vector_store %arg5[%c0_3, %c0_4], %6 {strides = array<i32>} : memref<64x256xf32, #tpu.memory_space<vmem>>, vector<64x256xf32>,
    return
  }
  func.func @transform_0(%arg0: i32, %arg1: i32) -> i32 {
    %c0_i32 = arith.constant 0 : i32
    %c0_i32_0 = arith.constant 0 : i32
    return %c0_i32 : i32
  }
  func.func @transform_1(%arg0: i32, %arg1: i32) -> i32 {
    %c0_i32 = arith.constant 0 : i32
    %c0_i32_0 = arith.constant 0 : i32
    return %c0_i32 : i32
  }
  func.func @transform_2(%arg0: i32, %arg1: i32) -> (i32, i32) {
    %c0_i32 = arith.constant 0 : i32
    return %arg0, %arg1 : i32, i32
  }
  func.func @transform_3(%arg0: i32, %arg1: i32) -> (i32, i32) {
    %c0_i32 = arith.constant 0 : i32
    return %arg0, %arg1 : i32, i32
  }
}

</mosaic_0001>

<bundles_post_ra>
// kernel: tpu_custom_call.1
= control target key start
LH: loop header
LB: loop body
LE: loop exit
PB: predicated region body
PF: predicated region fallthrough
CT: control target
= control target key end

     0   :  { %10 = vsyncpa [#allocation5], 0  ;;  %s246_s0 = inlined_call_operand.<no memory space> [shape: f32[1], index: 0, kind: input, shape index: {}]   ;;  %s247_s1 = inlined_call_operand.<no memory space> [shape: f32[1], index: 1, kind: input, shape index: {}]   ;;  %s248_s2 = inlined_call_operand.hbm [shape: f32[64,256], index: 2, kind: input, shape index: {}]   ;;  %s249_s3 = inlined_call_operand.hbm [shape: f32[64,256], index: 3, kind: output, shape index: {}]  }
   0x1   :  { %11 = vsyncpa [#allocation6], 0  ;;  %s168_s12 = smov [#allocation4]   ;;  %s120_s16 = scalar_lea.hbm %s248_s2, 2048 }
   0x2   :  { %s21_s13 = sshll.u32 %s168_s12, 4  ;;  %p121_p0 = scmp.ne.s32.totalorder %s248_s2, %s120_s16  ;;  %s22_s13 = int_to_ptr.vmem [resolvable:$true] %s21_s13 }
   0x3   :  { %p124_p1 = scmp.lt.u32.totalorder %s120_s16, %s248_s2 }
   0x5   :  { %p126_p2 = pnand %p124_p1, %p121_p0 }
   0x7   :  { %129 = shalt.err (!%p126_p2)
}
   0x8   :  { %s130_s21 = scalar_lea.vmem %s22_s13, 2048  ;;  %p135_p4 = scmp.lt.s32.totalorder %s22_s13, %s22_s13 }
   0x9   :  { %p131_p3 = scmp.ne.s32.totalorder %s22_s13, %s130_s21  ;;  %p136_p5 = scmp.lt.s32.totalorder %s130_s21, %s130_s21 }
   0xb   :  { %p137_p6 = por %p136_p5, %p135_p4 }
   0xd   :  { %p138_p7 = pnand %p137_p6, %p131_p3 }
   0xf   :  { %141 = shalt.err (!%p138_p7)
}
  0x10   :  { %s169_s22 = smov 256   ;;  %s170_s23 = smov 16  }
  0x11   :  { %27 = dma.hbm_to_vmem [thread:$0]  %s248_s2, 2048, %s22_s13, [#allocation5], %s169_s22, %s169_s22, %s170_s23  }
  0x12   :  { %164 = dma.done.wait [#allocation5], 2048  }
  0x13   :  { %165 = vsyncadd [#allocation5], 4294965248  ;;  %v48_v0 = vstv %s246_s0  ;;  %v31_v1 = vld [vmem:[#allocation4] sm:$0xff]  ;;  %v213_v2 = vstv %s247_s1  ;;  %v32_v3 = vld [vmem:[#allocation4 + $0x8] sm:$0xff]  ;;  %s171_s0 = smov [#allocation7]  }
  0x14   :  { %v33_v4 = vld [vmem:[#allocation4 + $0x10] sm:$0xff]  ;;  %v49_v5 = vmul.f32 %v48_v0, %v31_v1  ;;  %v50_v6 = vmul.f32 %v48_v0, %v32_v3  ;;  %v34_v8 = vld [vmem:[#allocation4 + $0x18] sm:$0xff]  ;;  %v35_v9 = vld [vmem:[#allocation4 + $0x20] sm:$0xff]  ;;  %s104_s1 = sshll.u32 %s171_s0, 4  ;;  %s105_s1 = int_to_ptr.vmem [resolvable:$true] %s104_s1 }
  0x15   :  { %v51_v7 = vmul.f32 %v48_v0, %v33_v4  ;;  %v36_v10 = vld [vmem:[#allocation4 + $0x28] sm:$0xff]  ;;  %v52_v11 = vmul.f32 %v48_v0, %v34_v8  ;;  %v53_v12 = vmul.f32 %v48_v0, %v35_v9  ;;  %v37_v14 = vld [vmem:[#allocation4 + $0x30] sm:$0xff]  ;;  %v38_v15 = vld [vmem:[#allocation4 + $0x38] sm:$0xff]  ;;  %s142_s2 = scalar_lea.vmem %s105_s1, 2048  ;;  %p147_p9 = scmp.lt.s32.totalorder %s105_s1, %s105_s1 }
  0x16   :  { %v54_v13 = vmul.f32 %v48_v0, %v36_v10  ;;  %v39_v16 = vld [vmem:[#allocation4 + $0x40] sm:$0xff]  ;;  %v67_v17 = vadd.f32 %v213_v2, %v49_v5  ;;  %v68_v18 = vadd.f32 %v213_v2, %v50_v6  ;;  %v55_v20 = vmul.f32 %v48_v0, %v37_v14  ;;  %v40_v21 = vld [vmem:[#allocation4 + $0x48] sm:$0xff]  ;;  %v41_v22 = vld [vmem:[#allocation4 + $0x50] sm:$0xff]  ;;  %p143_p8 = scmp.ne.s32.totalorder %s105_s1, %s142_s2  ;;  %p148_p10 = scmp.lt.s32.totalorder %s142_s2, %s142_s2 }
  0x17   :  { %v69_v19 = vadd.f32 %v213_v2, %v51_v7  ;;  %v42_v23 = vld [vmem:[#allocation4 + $0x58] sm:$0xff]  ;;  %v70_v24 = vadd.f32 %v213_v2, %v52_v11  ;;  %v71_v25 = vadd.f32 %v213_v2, %v53_v12  ;;  %v56_v27 = vmul.f32 %v48_v0, %v38_v15  ;;  %v43_v28 = vld [vmem:[#allocation4 + $0x60] sm:$0xff]  ;;  %v44_v29 = vld [vmem:[#allocation4 + $0x68] sm:$0xff] }
  0x18   :  { %v72_v26 = vadd.f32 %v213_v2, %v54_v13  ;;  %v45_v30 = vld [vmem:[#allocation4 + $0x70] sm:$0xff]  ;;  %83 = vst [vmem:[#allocation7] sm:$0xff] %v67_v17  ;;  %84 = vst [vmem:[#allocation7 + $0x8] sm:$0xff] %v68_v18  ;;  %v73_v31 = vadd.f32 %v213_v2, %v55_v20  ;;  %v57_v32 = vmul.f32 %v48_v0, %v39_v16  ;;  %v46_v35 = vld [vmem:[#allocation4 + $0x78] sm:$0xff]  ;;  %p149_p11 = por %p148_p10, %p147_p9 }
  0x19   :  { %85 = vst [vmem:[#allocation7 + $0x10] sm:$0xff] %v69_v19  ;;  %v58_v33 = vmul.f32 %v48_v0, %v40_v21  ;;  %v59_v34 = vmul.f32 %v48_v0, %v41_v22  ;;  %86 = vst [vmem:[#allocation7 + $0x18] sm:$0xff] %v70_v24  ;;  %v74_v36 = vadd.f32 %v213_v2, %v56_v27 }
  0x1a   :  { %87 = vst [vmem:[#allocation7 + $0x20] sm:$0xff] %v71_v25  ;;  %88 = vst [vmem:[#allocation7 + $0x28] sm:$0xff] %v72_v26  ;;  %v60_v37 = vmul.f32 %v48_v0, %v42_v23  ;;  %v61_v38 = vmul.f32 %v48_v0, %v43_v28  ;;  %v62_v39 = vmul.f32 %v48_v0, %v44_v29  ;;  %p150_p12 = pnand %p149_p11, %p143_p8 }
  0x1b   :  { %89 = vst [vmem:[#allocation7 + $0x30] sm:$0xff] %v73_v31  ;;  %v75_v40 = vadd.f32 %v213_v2, %v57_v32  ;;  %v76_v41 = vadd.f32 %v213_v2, %v58_v33  ;;  %v77_v42 = vadd.f32 %v213_v2, %v59_v34  ;;  %v63_v43 = vmul.f32 %v48_v0, %v45_v30 }
  0x1c   :  { %90 = vst [vmem:[#allocation7 + $0x38] sm:$0xff] %v74_v36  ;;  %v78_v44 = vadd.f32 %v213_v2, %v60_v37  ;;  %v79_v45 = vadd.f32 %v213_v2, %v61_v38  ;;  %v80_v46 = vadd.f32 %v213_v2, %v62_v39  ;;  %v64_v47 = vmul.f32 %v48_v0, %v46_v35 }
  0x1d   :  { %91 = vst [vmem:[#allocation7 + $0x40] sm:$0xff] %v75_v40  ;;  %92 = vst [vmem:[#allocation7 + $0x48] sm:$0xff] %v76_v41  ;;  %v81_v48 = vadd.f32 %v213_v2, %v63_v43 }
  0x1e   :  { %93 = vst [vmem:[#allocation7 + $0x50] sm:$0xff] %v77_v42  ;;  %94 = vst [vmem:[#allocation7 + $0x58] sm:$0xff] %v78_v44  ;;  %v82_v49 = vadd.f32 %v213_v2, %v64_v47 }
  0x1f   :  { %95 = vst [vmem:[#allocation7 + $0x60] sm:$0xff] %v79_v45  ;;  %96 = vst [vmem:[#allocation7 + $0x68] sm:$0xff] %v80_v46 }
  0x20   :  { %97 = vst [vmem:[#allocation7 + $0x70] sm:$0xff] %v81_v48  ;;  %98 = vst [vmem:[#allocation7 + $0x78] sm:$0xff] %v82_v49 }
  0x21   :  { %153 = shalt.err (!%p150_p12)
}
  0x22   :  { %s154_s5 = scalar_lea.hbm %s249_s3, 2048 }
  0x23   :  { %p155_p13 = scmp.ne.s32.totalorder %s249_s3, %s154_s5  ;;  %p158_p0 = scmp.lt.u32.totalorder %s154_s5, %s249_s3 }
  0x25   :  { %p160_p1 = pnand %p158_p0, %p155_p13 }
  0x27   :  { %163 = shalt.err (!%p160_p1)
}
  0x28   :  { %110 = dma.vmem_to_hbm [thread:$0]  %s105_s1, 2048, %s249_s3, [#allocation6], %s169_s22, %s169_s22, %s170_s23  }
  0x29   :  { %166 = dma.done.wait [#allocation6], 2048  }
  0x2a   :  { %167 = vsyncadd [#allocation6], 4294965248 }
  0x2b   :  { %114 = vsyncpa [#allocation5], 1 }
  0x2c   :  { %115 = vsyncpa [#allocation6], 1 }

</bundles_post_ra>
